<compile_context>
chip_gen: v6e
topology: v6e:2x2x1
jax: 0.10.0
libtpu: 0.0.40
codegen_flags: <defaults>
</compile_context>

<pallas_src>
import functools
import math

import jax
import jax.numpy as jnp
from jax.experimental import pallas as pl
from jax.experimental.pallas import tpu as pltpu

_LANE = 128
_SUBLANE = 8
_MAX_TILE_ROWS = 1024                       # review: 1024-row tiles are the sweet spot
_VMEM_INPUT_BUDGET = 24 * 1024 * 1024       # double-buffered input blocks
_VMEM_LIMIT = 32 * 1024 * 1024


def _pow_cost(n: int) -> int:
    """Number of multiplies _int_pow uses for x**n (binary exponentiation)."""
    if n <= 1:
        return 0
    return (n.bit_length() - 1) + (bin(n).count("1") - 1)


def _int_pow(x, n: int):
    """x ** n for static non-negative integer n, via trace-time binary exponentiation."""
    if n == 0:
        return jnp.ones_like(x)
    result = None
    base = x
    while n > 0:
        if n & 1:
            result = base if result is None else result * base
        n >>= 1
        if n:
            base = base * base
    return result


def _asl_kernel(x_ref, t_ref, o_ref, *, gamma_neg, gamma_pos, prob_margin, eps,
                n_rows, tile_rows, tiles_per_split, binary_targets, int_gammas,
                needs_mask, fold):
    split = pl.program_id(0)   # "parallel" axis (one slot per TensorCore on v7x)
    step = pl.program_id(1)    # "arbitrary" reduction axis

    @pl.when(step == 0)
    def _():
        o_ref[...] = jnp.zeros_like(o_ref)

    x = x_ref[...].astype(jnp.float32)
    t = t_ref[...].astype(jnp.float32)

    # Single EUP op for the sigmoid: sigmoid(x) = 0.5 * tanh(x / 2) + 0.5.
    xs_pos = 0.5 * jnp.tanh(0.5 * x) + 0.5
    xs_neg = 1.0 - xs_pos
    if prob_margin > 0:
        xs_neg = jnp.minimum(xs_neg + prob_margin, 1.0)

    use_focus = (gamma_neg > 0) or (gamma_pos > 0)

    if binary_targets:
        # Hard 0/1 labels: one log per element; integer-gamma focusing weights
        # are pure VPU multiplies (no exp/log from jnp.power).
        is_pos = t > 0.5
        prob = jnp.where(is_pos, xs_pos, xs_neg)
        loss = jnp.log(jnp.maximum(prob, eps))
        if use_focus:
            base = 1.0 - prob
            if int_gammas:
                gp, gn = int(round(gamma_pos)), int(round(gamma_neg))
                if gp == gn:
                    w = _int_pow(base, gp)
                else:
                    g_min, diff = min(gp, gn), abs(gp - gn)
                    if _pow_cost(g_min) + _pow_cost(diff) + 1 < _pow_cost(gp) + _pow_cost(gn):
                        # Factorised: shared base^min, extra base^|diff| on one side.
                        w_lo = _int_pow(base, g_min)
                        w_hi = w_lo * _int_pow(base, diff)
                    else:
                        w_lo = _int_pow(base, g_min)
                        w_hi = _int_pow(base, max(gp, gn))
                    if gp > gn:
                        w = jnp.where(is_pos, w_hi, w_lo)
                    else:
                        w = jnp.where(is_pos, w_lo, w_hi)
            else:
                expo = jnp.where(is_pos, jnp.float32(gamma_pos), jnp.float32(gamma_neg))
                w = jnp.power(base, expo)
            loss = loss * w
    else:
        # General path: mirrors the PyTorch alibaba-miil math exactly (soft labels OK).
        anti_t = 1.0 - t
        loss = t * jnp.log(jnp.maximum(xs_pos, eps))
        loss = loss + anti_t * jnp.log(jnp.maximum(xs_neg, eps))
        if use_focus:
            base = 1.0 - xs_pos * t - xs_neg * anti_t
            expo = gamma_pos * t + gamma_neg * anti_t
            loss = loss * jnp.power(base, expo)

    if needs_mask:
        # Tail rows (and fully out-of-range blocks re-read via the clamped
        # index_map) contribute exactly 0, whatever garbage they hold.
        row0 = (split * tiles_per_split + step) * tile_rows
        row_ids = jax.lax.broadcasted_iota(jnp.int32, loss.shape, 0) + row0
        loss = jnp.where(row_ids < n_rows, loss, 0.0)

    if fold:
        # Pairwise tree-fold rows -> 8 sublanes: static 8-row slices are aligned
        # to vreg tiles, so this is pure elementwise VPU adds (no XLU reduce).
        acc_rows = o_ref.shape[0]
        parts = [loss[g * acc_rows:(g + 1) * acc_rows]
                 for g in range(tile_rows // acc_rows)]
        while len(parts) > 1:
            nxt = [parts[j] + parts[j + 1] for j in range(0, len(parts) - 1, 2)]
            if len(parts) % 2:
                nxt.append(parts[-1])
            parts = nxt
        folded = parts[0]
    else:
        folded = loss
    o_ref[...] += folded


def asymmetric_loss(inputs, targets, *, gamma_neg=4.0, gamma_pos=1.0,
                    prob_margin=0.05, reduction="mean",
                    assume_binary_targets=False):
    """Asymmetric multi-label loss (alibaba-miil implementation), forward only.

    inputs/targets: (batch_size, n_classes); returns a scalar float32.
    Set assume_binary_targets=True only if targets are hard 0/1 labels (opt-in
    fast path); the default general path matches PyTorch for soft labels too.
    """
    assert inputs.shape == targets.shape
    reduction = reduction.lower()
    if reduction not in ("mean", "sum"):
        # TODO(synk): reduction="none" (per-element loss map) not implemented in-kernel.
        raise NotImplementedError(f"reduction={reduction!r} not supported")
    # TODO(synk): per-class tensor-valued gammas, the "deep-psp" variant and a
    # custom VJP (disable_torch_grad_focal_loss semantics) are not implemented.

    n_total = math.prod(inputs.shape)
    assert n_total > 0

    # 2-D (rows, n_classes) view: free for contiguous arrays, no HBM copy.
    n_classes = inputs.shape[-1]
    x2 = inputs.reshape(-1, n_classes)
    if targets.dtype == jnp.bool_:
        targets = targets.astype(jnp.float32)   # rare; bool refs are awkward in-kernel
    t2 = targets.reshape(-1, n_classes)
    n_rows = x2.shape[0]

    # Row-tile size: largest multiple of 8 (<= 1024 rows) whose double-buffered
    # x+t blocks fit the VMEM budget.  Inputs stream in their native dtype.
    lanes = -(-n_classes // _LANE) * _LANE
    bytes_per_row = lanes * (x2.dtype.itemsize + t2.dtype.itemsize) * 2  # *2: double buffer
    tile_rows = max(_SUBLANE, (_VMEM_INPUT_BUDGET // bytes_per_row) // _SUBLANE * _SUBLANE)
    tile_rows = min(tile_rows, _MAX_TILE_ROWS)
    if n_rows <= tile_rows:
        if n_rows % _SUBLANE == 0 or n_rows <= _SUBLANE:
            tile_rows = n_rows
        else:
            tile_rows = max(_SUBLANE, (n_rows // _SUBLANE) * _SUBLANE)
    n_blocks = -(-n_rows // tile_rows)
    # TODO(synk): extremely large n_classes (a single row-block wider than VMEM)
    # would need column tiling; not implemented (n_classes is small for this loss).

    # Split the block range across a leading "parallel" axis of 2 so v7x's two
    # TensorCores each own an independent partial accumulator (serial and
    # essentially free on single-core v5e/v6e).
    num_splits = 2 if n_blocks >= 2 else 1
    tiles_per_split = -(-n_blocks // num_splits)
    overshoot = num_splits * tiles_per_split > n_blocks
    needs_mask = overshoot or (n_blocks * tile_rows > n_rows)

    acc_rows = _SUBLANE if tile_rows % _SUBLANE == 0 else tile_rows
    fold = acc_rows != tile_rows

    def block_index(split, step):
        b = split * tiles_per_split + step
        if overshoot:
            b = jnp.minimum(b, n_blocks - 1)    # keep DMA in-bounds; row mask zeroes it
        return (b, 0)

    int_gammas = (float(gamma_neg).is_integer() and float(gamma_pos).is_integer()
                  and 0 <= float(gamma_neg) <= 64 and 0 <= float(gamma_pos) <= 64)

    kernel = functools.partial(
        _asl_kernel,
        gamma_neg=float(gamma_neg),
        gamma_pos=float(gamma_pos),
        prob_margin=float(prob_margin),
        eps=1e-8,
        n_rows=n_rows,
        tile_rows=tile_rows,
        tiles_per_split=tiles_per_split,
        binary_targets=bool(assume_binary_targets),
        int_gammas=int_gammas,
        needs_mask=needs_mask,
        fold=fold,
    )

    partials = pl.pallas_call(
        kernel,
        out_shape=jax.ShapeDtypeStruct((num_splits, acc_rows, n_classes), jnp.float32),
        grid=(num_splits, tiles_per_split),
        in_specs=[
            pl.BlockSpec((tile_rows, n_classes), block_index),
            pl.BlockSpec((tile_rows, n_classes), block_index),
        ],
        out_specs=pl.BlockSpec((None, acc_rows, n_classes),
                               lambda split, step: (split, 0, 0)),
        compiler_params=pltpu.CompilerParams(
            dimension_semantics=("parallel", "arbitrary"),
            vmem_limit_bytes=_VMEM_LIMIT,
        ),
    )(x2, t2)

    # Tiny final cross-lane reduce + sign / mean scaling in the wrapper.
    scale = (1.0 / float(n_total)) if reduction == "mean" else 1.0
    return (-scale) * jnp.sum(partials)


def _asymmetric_loss_ref(inputs, targets, *, gamma_neg=4.0, gamma_pos=1.0,
                         prob_margin=0.05, eps=1e-8, reduction="mean"):
    """Pure-JAX reference mirroring the PyTorch alibaba-miil forward."""
    x = inputs.astype(jnp.float32)
    t = targets.astype(jnp.float32)
    anti_t = 1.0 - t
    xs_pos = jax.nn.sigmoid(x)
    xs_neg = 1.0 - xs_pos
    if prob_margin > 0:
        xs_neg = jnp.minimum(xs_neg + prob_margin, 1.0)
    loss = t * jnp.log(jnp.maximum(xs_pos, eps))
    loss = loss + anti_t * jnp.log(jnp.maximum(xs_neg, eps))
    if gamma_neg > 0 or gamma_pos > 0:
        xp = xs_pos * t
        xn = xs_neg * anti_t
        w = jnp.power(1.0 - xp - xn, gamma_pos * t + gamma_neg * anti_t)
        loss = loss * w
    if reduction == "mean":
        return -jnp.mean(loss)
    return -jnp.sum(loss)


if __name__ == "__main__":
    key = jax.random.PRNGKey(0)
    k1, k2, k3, k4, k5 = jax.random.split(key, 5)

    # Module-native small shape: (batch_size, n_classes).
    B, C = 4, 26
    logits = jax.random.normal(k1, (B, C), dtype=jnp.float32)
    labels = (jax.random.uniform(k2, (B, C)) > 0.5).astype(jnp.float32)

    loss = jax.block_until_ready(
        asymmetric_loss(logits, labels, assume_binary_targets=True))
    ref = _asymmetric_loss_ref(logits, labels)
    assert jnp.allclose(loss, ref, rtol=1e-4, atol=1e-6), (loss, ref)

    # General path (soft labels, exact PyTorch math) with "sum" reduction.
    soft = jax.random.uniform(k3, (B, C), dtype=jnp.float32)
    loss_soft = jax.block_until_ready(asymmetric_loss(logits, soft, reduction="sum"))
    ref_soft = _asymmetric_loss_ref(logits, soft, reduction="sum")
    assert jnp.allclose(loss_soft, ref_soft, rtol=1e-4, atol=1e-5), (loss_soft, ref_soft)

    # Shape exercising the multi-block grid, the 2-way parallel split, the
    # clamped out-of-range block and the in-kernel tail-row masking.
    B2, C2 = 2504, 257
    logits2 = jax.random.normal(k4, (B2, C2), dtype=jnp.float32)
    labels2 = (jax.random.uniform(k5, (B2, C2)) > 0.5).astype(jnp.float32)

    loss2 = jax.block_until_ready(
        asymmetric_loss(logits2, labels2, assume_binary_targets=True))
    ref2 = _asymmetric_loss_ref(logits2, labels2)
    assert jnp.allclose(loss2, ref2, rtol=2e-4, atol=1e-5), (loss2, ref2)

    print("KERNEL_OK")
</pallas_src>

<mosaic_0001>
module attributes {stable_mosaic.version = 11 : i64} {
  func.func @_asl_kernel(%arg0: i32, %arg1: i32, %arg2: memref<4x26xf32, #tpu.memory_space<vmem>>, %arg3: memref<4x26xf32, #tpu.memory_space<vmem>>, %arg4: memref<1x4x26xf32, #tpu.memory_space<vmem>>) attributes {dimension_semantics = [#tpu.dimension_semantics<parallel>, #tpu.dimension_semantics<arbitrary>], iteration_bounds = array<i64: 1, 1>, scalar_prefetch = 0 : i64, scratch_operands = 0 : i64, tpu.core_type = #tpu.core_type<tc>, window_params = [{transform_indices = @transform_0, window_bounds = array<i64: 4, 26>}, {transform_indices = @transform_1, window_bounds = array<i64: 4, 26>}, {transform_indices = @transform_2, window_bounds = array<i64: 1, 4, 26>}]} {
    %c0_i32 = arith.constant 0 : i32
    %0 = arith.cmpi eq, %arg1, %c0_i32 : i32
    %1 = arith.extui %0 : i1 to i32
    %c0_i32_0 = arith.constant 0 : i32
    %2 = arith.cmpi ne, %1, %c0_i32_0 : i32
    scf.if %2 {
      %cst_18 = arith.constant 0.000000e+00 : f32
      %36 = vector.broadcast %cst_18 : f32 to vector<4x26xf32>
      %c0_19 = arith.constant 0 : index
      %c0_20 = arith.constant 0 : index
      %c0_21 = arith.constant 0 : index
      %37 = vector.load %arg4[%c0_19, %c0_20, %c0_21] : memref<1x4x26xf32, #tpu.memory_space<vmem>>, vector<1x4x26xf32>
      %38 = vector.shape_cast %37 : vector<1x4x26xf32> to vector<4x26xf32>
      %39 = vector.shape_cast %36 : vector<4x26xf32> to vector<1x4x26xf32>
      tpu.vector_store %arg4[%c0_19, %c0_20, %c0_21], %39 {strides = array<i32>} : memref<1x4x26xf32, #tpu.memory_space<vmem>>, vector<1x4x26xf32>,
    } else {
    }
    %c0 = arith.constant 0 : index
    %c0_1 = arith.constant 0 : index
    %3 = vector.load %arg2[%c0, %c0_1] : memref<4x26xf32, #tpu.memory_space<vmem>>, vector<4x26xf32>
    %c0_2 = arith.constant 0 : index
    %c0_3 = arith.constant 0 : index
    %4 = vector.load %arg3[%c0_2, %c0_3] : memref<4x26xf32, #tpu.memory_space<vmem>>, vector<4x26xf32>
    %cst = arith.constant 5.000000e-01 : f32
    %5 = vector.broadcast %cst : f32 to vector<4x26xf32>
    %6 = arith.mulf %5, %3 : vector<4x26xf32>
    %7 = math.tanh %6 : vector<4x26xf32>
    %cst_4 = arith.constant 5.000000e-01 : f32
    %8 = vector.broadcast %cst_4 : f32 to vector<4x26xf32>
    %9 = arith.mulf %8, %7 : vector<4x26xf32>
    %cst_5 = arith.constant 5.000000e-01 : f32
    %10 = vector.broadcast %cst_5 : f32 to vector<4x26xf32>
    %11 = arith.addf %9, %10 : vector<4x26xf32>
    %cst_6 = arith.constant 1.000000e+00 : f32
    %12 = vector.broadcast %cst_6 : f32 to vector<4x26xf32>
    %13 = arith.subf %12, %11 : vector<4x26xf32>
    %cst_7 = arith.constant 5.000000e-02 : f32
    %14 = vector.broadcast %cst_7 : f32 to vector<4x26xf32>
    %15 = arith.addf %13, %14 : vector<4x26xf32>
    %cst_8 = arith.constant 1.000000e+00 : f32
    %16 = vector.broadcast %cst_8 : f32 to vector<4x26xf32>
    %17 = arith.minimumf %15, %16 : vector<4x26xf32>
    %cst_9 = arith.constant 5.000000e-01 : f32
    %18 = vector.broadcast %cst_9 : f32 to vector<4x26xf32>
    %19 = arith.cmpf ogt, %4, %18 : vector<4x26xf32>
    %20 = arith.select %19, %11, %17 : vector<4x26xi1>, vector<4x26xf32>
    %cst_10 = arith.constant 9.99999993E-9 : f32
    %21 = vector.broadcast %cst_10 : f32 to vector<4x26xf32>
    %22 = arith.maximumf %20, %21 : vector<4x26xf32>
    %23 = math.log %22 : vector<4x26xf32>
    %cst_11 = arith.constant 1.000000e+00 : f32
    %24 = vector.broadcast %cst_11 : f32 to vector<4x26xf32>
    %25 = arith.subf %24, %20 : vector<4x26xf32>
    %26 = arith.mulf %25, %25 : vector<4x26xf32>
    %27 = arith.mulf %26, %26 : vector<4x26xf32>
    %28 = arith.select %19, %25, %27 : vector<4x26xi1>, vector<4x26xf32>
    %29 = arith.mulf %23, %28 : vector<4x26xf32>
    %c0_12 = arith.constant 0 : index
    %c0_13 = arith.constant 0 : index
    %c0_14 = arith.constant 0 : index
    %30 = vector.load %arg4[%c0_12, %c0_13, %c0_14] : memref<1x4x26xf32, #tpu.memory_space<vmem>>, vector<1x4x26xf32>
    %31 = vector.shape_cast %30 : vector<1x4x26xf32> to vector<4x26xf32>
    %32 = arith.addf %31, %29 : vector<4x26xf32>
    %c0_15 = arith.constant 0 : index
    %c0_16 = arith.constant 0 : index
    %c0_17 = arith.constant 0 : index
    %33 = vector.load %arg4[%c0_15, %c0_16, %c0_17] : memref<1x4x26xf32, #tpu.memory_space<vmem>>, vector<1x4x26xf32>
    %34 = vector.shape_cast %33 : vector<1x4x26xf32> to vector<4x26xf32>
    %35 = vector.shape_cast %32 : vector<4x26xf32> to vector<1x4x26xf32>
    tpu.vector_store %arg4[%c0_15, %c0_16, %c0_17], %35 {strides = array<i32>} : memref<1x4x26xf32, #tpu.memory_space<vmem>>, vector<1x4x26xf32>,
    return
  }
  func.func @transform_0(%arg0: i32, %arg1: i32) -> (i32, i32) {
    %c1_i32 = arith.constant 1 : i32
    %0 = arith.muli %arg0, %c1_i32 : i32
    %1 = arith.addi %0, %arg1 : i32
    %c0_i32 = arith.constant 0 : i32
    %c0_i32_0 = arith.constant 0 : i32
    return %1, %c0_i32 : i32, i32
  }
  func.func @transform_1(%arg0: i32, %arg1: i32) -> (i32, i32) {
    %c1_i32 = arith.constant 1 : i32
    %0 = arith.muli %arg0, %c1_i32 : i32
    %1 = arith.addi %0, %arg1 : i32
    %c0_i32 = arith.constant 0 : i32
    %c0_i32_0 = arith.constant 0 : i32
    return %1, %c0_i32 : i32, i32
  }
  func.func @transform_2(%arg0: i32, %arg1: i32) -> (i32, i32, i32) {
    %c0_i32 = arith.constant 0 : i32
    %c0_i32_0 = arith.constant 0 : i32
    %c0_i32_1 = arith.constant 0 : i32
    return %arg0, %c0_i32, %c0_i32_0 : i32, i32, i32
  }
}

</mosaic_0001>

<bundles_post_ra>
// kernel: tpu_custom_call.1
= control target key start
LH: loop header
LB: loop body
LE: loop exit
PB: predicated region body
PF: predicated region fallthrough
CT: control target
= control target key end

     0   :  { %7 = vsyncpa [#allocation3], 0  ;;  %s193_s0 = inlined_call_operand.hbm [shape: f32[4,26], index: 0, kind: input, shape index: {}]   ;;  %s194_s1 = inlined_call_operand.hbm [shape: f32[4,26], index: 1, kind: input, shape index: {}]   ;;  %s195_s2 = inlined_call_operand.hbm [shape: f32[1,4,26], index: 2, kind: output, shape index: {}]  }
   0x1   :  { %8 = vsyncpa [#allocation6], 0 }
   0x2   :  { %9 = vsyncpa [#allocation4], 0  ;;  %s163_s9 = smov [#allocation2]   ;;  %s164_s11 = smov [#allocation5]  }
   0x3   :  { %s19_s10 = sshll.u32 %s163_s9, 4  ;;  %s32_s12 = sshll.u32 %s164_s11, 4  ;;  %s20_s10 = int_to_ptr.vmem [resolvable:$true] %s19_s10  ;;  %s33_s12 = int_to_ptr.vmem [resolvable:$true] %s32_s12 }
   0x4   :  { %s105_s13 = scalar_lea.vmem %s20_s10, 64  ;;  %p110_p1 = scmp.lt.s32.totalorder %s20_s10, %s20_s10 }
   0x5   :  { %p106_p0 = scmp.ne.s32.totalorder %s20_s10, %s105_s13  ;;  %p111_p2 = scmp.lt.s32.totalorder %s105_s13, %s105_s13 }
   0x7   :  { %p112_p3 = por %p111_p2, %p110_p1 }
   0x9   :  { %p113_p4 = pnand %p112_p3, %p106_p0 }
   0xb   :  { %116 = shalt.err (!%p113_p4)
}
   0xc   :  { %22 = dma.hbm_to_vmem [thread:$0]  %s193_s0, 64, %s20_s10, [#allocation3]  }
   0xd   :  { %s125_s16 = scalar_lea.vmem %s33_s12, 64  ;;  %p130_p6 = scmp.lt.s32.totalorder %s33_s12, %s33_s12 }
   0xe   :  { %p126_p5 = scmp.ne.s32.totalorder %s33_s12, %s125_s16  ;;  %p131_p7 = scmp.lt.s32.totalorder %s125_s16, %s125_s16 }
  0x10   :  { %p132_p8 = por %p131_p7, %p130_p6 }
  0x12   :  { %p133_p9 = pnand %p132_p8, %p126_p5 }
  0x14   :  { %136 = shalt.err (!%p133_p9)
}
  0x15   :  { %35 = dma.hbm_to_vmem [thread:$0]  %s194_s1, 64, %s33_s12, [#allocation6]  }
  0x16   :  { %157 = dma.done.wait [#allocation3], 64  }
  0x17   :  { %158 = vsyncadd [#allocation3], 4294967232 }
  0x18   :  { %159 = dma.done.wait [#allocation6], 64  }
  0x19   :  { %160 = vsyncadd [#allocation6], 4294967232  ;;  %vm48_vm0 = vcmask 207872   ;;  %v165_v0 = vmov 0.0   ;;  %v50_v1 = vld [vmem:[#allocation2] sm:$0xf] }
  0x1a   :  { %49 = vst.msk [vmem:[#allocation7] sm:$0xf] %vm48_vm0, %v165_v0  ;;  %v52_v2 = vmul.f32 0.5, %v50_v1  ;;  %v51_v6 = vld [vmem:[#allocation5] sm:$0xf]  ;;  %s166_s0 = smov [#allocation7]  }
  0x1b   :  { %vm59_vm1 = vcmp.gt.f32.partialorder %v51_v6, 0.5  ;;  %s79_s1 = sshll.u32 %s166_s0, 4  ;;  %s80_s1 = int_to_ptr.vmem [resolvable:$true] %s79_s1 }
  0x1c   :  { %93 = vtanh.f32 %v52_v2  ;;  %s137_s19 = scalar_lea.vmem %s80_s1, 64  ;;  %p142_p11 = scmp.lt.s32.totalorder %s80_s1, %s80_s1 }
  0x1d   :  { %p138_p10 = scmp.ne.s32.totalorder %s80_s1, %s137_s19  ;;  %p143_p12 = scmp.lt.s32.totalorder %s137_s19, %s137_s19 }
  0x1f   :  { %p144_p13 = por %p143_p12, %p142_p11 }
  0x21   :  { %v69_v18 = vld [vmem:[#allocation7] sm:$0xf]  ;;  %p145_p0 = pnand %p144_p13, %p138_p10 }
  0x29   :  { %v94_v3 = vpop.eup %93 }
  0x2a   :  { %v54_v4 = vmul.f32 0.5, %v94_v3 }
  0x2c   :  { %v55_v5 = vadd.f32 0.5, %v54_v4 }
  0x2e   :  { %v56_v7 = vsub.f32 1.0, %v55_v5 }
  0x30   :  { %v57_v8 = vadd.f32 0.05, %v56_v7 }
  0x32   :  { %v58_v9 = vmin.f32 %v57_v8, 1.0 }
  0x34   :  { %v60_v10 = vsel %vm59_vm1, %v55_v5, %v58_v9 }
  0x35   :  { %v61_v11 = vmax.f32 %v60_v10, 1e-08  ;;  %v64_v12 = vsub.f32 1.0, %v60_v10 }
  0x37   :  { %95 = vlog2.f32 %v61_v11  ;;  %v65_v13 = vmul.f32 %v64_v12, %v64_v12 }
  0x39   :  { %v66_v14 = vmul.f32 %v65_v13, %v65_v13 }
  0x3b   :  { %v67_v16 = vsel %vm59_vm1, %v64_v12, %v66_v14 }
  0x44   :  { %v96_v15 = vpop.eup %95 }
  0x45   :  { %v63_v17 = vmul.f32 0.6931472, %v96_v15 }
  0x47   :  { %v68_v19 = vmul.f32 %v67_v16, %v63_v17 }
  0x49   :  { %v70_v20 = vadd.f32 %v69_v18, %v68_v19 }
  0x4b   :  { %72 = vst.msk [vmem:[#allocation7] sm:$0xf] %vm48_vm0, %v70_v20 }
  0x4c   :  { %148 = shalt.err (!%p145_p0)
}
  0x4d   :  { %82 = dma.vmem_to_hbm [thread:$0]  %s80_s1, 64, %s195_s2, [#allocation4]  }
  0x4e   :  { %161 = dma.done.wait [#allocation4], 64  }
  0x4f   :  { %162 = vsyncadd [#allocation4], 4294967232 }
  0x50   :  { %86 = vsyncpa [#allocation3], 1 }
  0x51   :  { %87 = vsyncpa [#allocation6], 1 }
  0x52   :  { %88 = vsyncpa [#allocation4], 1 }

</bundles_post_ra>
